<compile_context>
chip_gen: v7x
topology: tpu7x:2x2x1
jax: 0.10.0
libtpu: 0.0.40
codegen_flags: <defaults>
</compile_context>

<pallas_src>
import functools
import math

import jax
import jax.numpy as jnp
from jax.experimental import pallas as pl
from jax.experimental.pallas import tpu as pltpu


NEG_SLOPE = 0.01   # nn.LeakyReLU default negative_slope
BN_EPS = 1e-5      # nn.BatchNorm2d default eps


# --------------------------------------------------------------------------
# Kernel 1: pairwise-feature MLP -> sim_val
# --------------------------------------------------------------------------
def _sim_mlp_kernel(xi_ref, xall_ref, w1t_ref, s1_ref, t1_ref,
                    w2t_ref, s2_ref, t2_ref, w3_ref, b3_ref, sim_ref):
    ti, feat = xi_ref.shape
    n_all = xall_ref.shape[0]

    xi = xi_ref[...]                                  # (ti, F)   row block
    xa = xall_ref[...]                                # (Np, F)   all nodes (resident)

    # Pairwise |x_i - x_j| for this row block against all nodes, flattened to
    # a 2-D (ti*Np, F) slab (leading-dim merge; Np is a multiple of 8 so the
    # reshape is layout-preserving).
    pairs = jnp.abs(xi[:, None, :] - xa[None, :, :])  # (ti, Np, F)
    pf = pairs.reshape(ti * n_all, feat)              # (ti*Np, F)

    # conv0 (1x1, no bias) + folded BatchNorm + LeakyReLU
    h = jnp.dot(pf, w1t_ref[...], preferred_element_type=jnp.float32)
    h = h * s1_ref[...] + t1_ref[...]
    h = jnp.where(h > 0, h, NEG_SLOPE * h)

    # conv1 (1x1, no bias) + folded BatchNorm + LeakyReLU
    h = jnp.dot(h.astype(w2t_ref.dtype), w2t_ref[...],
                preferred_element_type=jnp.float32)
    h = h * s2_ref[...] + t2_ref[...]
    h = jnp.where(h > 0, h, NEG_SLOPE * h)

    # conv_out (1x1, with bias) + sigmoid
    logit = jnp.dot(h.astype(w3_ref.dtype), w3_ref[...],
                    preferred_element_type=jnp.float32) + b3_ref[...]
    sim_ref[...] = jax.nn.sigmoid(logit).astype(sim_ref.dtype)


# --------------------------------------------------------------------------
# Kernel 2: edge_feat = (sim + I + 1e-6), column-normalized
# --------------------------------------------------------------------------
def _edge_norm_kernel(sim_ref, edge_ref):
    n, tc = sim_ref.shape
    j0 = pl.program_id(0) * tc
    rows = jax.lax.broadcasted_iota(jnp.int32, (n, tc), 0)
    cols = jax.lax.broadcasted_iota(jnp.int32, (n, tc), 1) + j0
    eye = (rows == cols).astype(jnp.float32)
    e = sim_ref[...].astype(jnp.float32) + eye + 1e-6
    col_sum = jnp.sum(e, axis=0, keepdims=True)       # (1, tc)
    edge_ref[...] = (e / col_sum).astype(edge_ref.dtype)


def _round_up(x, m):
    return (x + m - 1) // m * m


# --------------------------------------------------------------------------
# Wrapper
# --------------------------------------------------------------------------
def edgenet_forward(node_feat, params, *, use_bf16=False):
    """EdgeNet.forward.

    node_feat: (N, F) float32
    params: dict with
      w1 (H1, F), g1/b1/m1/v1 (H1,)   [conv0 weight + BN1 gamma/beta/mean/var]
      w2 (H2, H1), g2/b2/m2/v2 (H2,)  [conv1 weight + BN2]
      w3 (H2,), b3 ()                 [conv_out weight + bias]
    returns: (edge_feat (1, N, N) f32, sim_val (N, N) f32)
    """
    n, feat = node_feat.shape
    w1, w2, w3, b3 = params["w1"], params["w2"], params["w3"], params["b3"]
    h1 = w1.shape[0]
    h2 = w2.shape[0]

    def bn_fold(gamma, beta, mean, var):
        s = gamma / jnp.sqrt(var + BN_EPS)
        t = beta - mean * s
        return (s.reshape(1, -1).astype(jnp.float32),
                t.reshape(1, -1).astype(jnp.float32))

    s1, t1 = bn_fold(params["g1"], params["b1"], params["m1"], params["v1"])
    s2, t2 = bn_fold(params["g2"], params["b2"], params["m2"], params["v2"])

    op_dtype = jnp.bfloat16 if use_bf16 else jnp.float32
    w1t = jnp.asarray(w1).T.astype(op_dtype)              # (F, H1)
    w2t = jnp.asarray(w2).T.astype(op_dtype)              # (H1, H2)
    w3c = jnp.asarray(w3).reshape(h2, 1).astype(op_dtype)  # (H2, 1)
    b3m = jnp.asarray(b3, jnp.float32).reshape(1, 1)

    # Pad node count to a sublane multiple so row blocks tile cleanly.
    n_pad = _round_up(max(n, 8), 8)
    assert n_pad <= 4096, "see TODO(synk): tile the j axis for very large graphs"
    x = node_feat.astype(op_dtype)
    if n_pad != n:
        x = jnp.pad(x, ((0, n_pad - n), (0, 0)))

    # Row-block size: largest divisor of n_pad (multiple of 8) that keeps the
    # per-step pair count <= 8192 rows and leaves >= 2 parallel grid steps
    # (so both v7x TensorCores get work; v5e/v6e just loop the grid).
    cands = [d for d in range(8, n_pad + 1, 8) if n_pad % d == 0]
    viable = [d for d in cands if (n_pad // d) >= 2 and d * n_pad <= 8192]
    ti = max(viable) if viable else cands[0]
    grid = (n_pad // ti,)

    bpe = jnp.dtype(op_dtype).itemsize
    flops = 2 * n_pad * n_pad * (feat * h1 + h1 * h2 + h2)
    bytes_accessed = int(
        bpe * (2 * n_pad * feat + feat * h1 + h1 * h2 + h2)
        + 4 * (2 * (h1 + h2) + 1 + n_pad * n_pad))
    cost = pl.CostEstimate(flops=flops, transcendentals=n_pad * n_pad,
                           bytes_accessed=bytes_accessed)

    sim_flat = pl.pallas_call(
        _sim_mlp_kernel,
        out_shape=jax.ShapeDtypeStruct((n_pad * n_pad, 1), jnp.float32),
        grid_spec=pltpu.PrefetchScalarGridSpec(
            num_scalar_prefetch=0,
            grid=grid,
            in_specs=[
                pl.BlockSpec((ti, feat), lambda i: (i, 0)),     # x row block
                pl.BlockSpec((n_pad, feat), lambda i: (0, 0)),  # all x (resident)
                pl.BlockSpec((feat, h1), lambda i: (0, 0)),     # W1^T (resident)
                pl.BlockSpec((1, h1), lambda i: (0, 0)),        # BN1 scale
                pl.BlockSpec((1, h1), lambda i: (0, 0)),        # BN1 shift
                pl.BlockSpec((h1, h2), lambda i: (0, 0)),       # W2^T (resident)
                pl.BlockSpec((1, h2), lambda i: (0, 0)),        # BN2 scale
                pl.BlockSpec((1, h2), lambda i: (0, 0)),        # BN2 shift
                pl.BlockSpec((h2, 1), lambda i: (0, 0)),        # w3 column
                pl.BlockSpec((1, 1), lambda i: (0, 0)),         # conv_out bias
            ],
            out_specs=pl.BlockSpec((ti * n_pad, 1), lambda i: (i, 0)),
        ),
        compiler_params=pltpu.CompilerParams(
            dimension_semantics=("parallel",),
            vmem_limit_bytes=48 * 1024 * 1024,
        ),
        cost_estimate=cost,
    )(x, x, w1t, s1, t1, w2t, s2, t2, w3c, b3m)

    sim_val = sim_flat.reshape(n_pad, n_pad)[:n, :n]

    # Stage 2: edge_feat = (sim + I + 1e-6) / column sums.
    tc = min(n, 512) if (n % 128 == 0) else n
    edge2d = pl.pallas_call(
        _edge_norm_kernel,
        out_shape=jax.ShapeDtypeStruct((n, n), jnp.float32),
        grid_spec=pltpu.PrefetchScalarGridSpec(
            num_scalar_prefetch=0,
            grid=(n // tc,),
            in_specs=[pl.BlockSpec((n, tc), lambda j: (0, j))],
            out_specs=pl.BlockSpec((n, tc), lambda j: (0, j)),
        ),
        compiler_params=pltpu.CompilerParams(
            dimension_semantics=("parallel",)),
    )(sim_val)

    return edge2d[None], sim_val


# --------------------------------------------------------------------------
# Pure-JAX reference (mirrors the PyTorch forward with inference-mode BN)
# --------------------------------------------------------------------------
def edgenet_reference(node_feat, params):
    n, feat = node_feat.shape
    x_ij = jnp.abs(node_feat[:, None, :] - node_feat[None, :, :]).reshape(n * n, feat)

    def bn(z, g, b, m, v):
        return (z - m) / jnp.sqrt(v + BN_EPS) * g + b

    h = x_ij @ params["w1"].T
    h = bn(h, params["g1"], params["b1"], params["m1"], params["v1"])
    h = jnp.where(h > 0, h, NEG_SLOPE * h)
    h = h @ params["w2"].T
    h = bn(h, params["g2"], params["b2"], params["m2"], params["v2"])
    h = jnp.where(h > 0, h, NEG_SLOPE * h)
    logit = h @ params["w3"] + params["b3"]
    sim = jax.nn.sigmoid(logit).reshape(n, n)
    edge = sim + jnp.eye(n, dtype=sim.dtype) + 1e-6
    edge = edge / jnp.sum(edge, axis=0, keepdims=True)
    return edge[None], sim


if __name__ == "__main__":
    # Small shapes consistent with EdgeNet: in_features=32, num_features=16,
    # ratio=(2,1) -> hidden dims [32, 16]; num_data (graph nodes) = 16.
    in_features = 32
    num_features = 16
    ratio = (2, 1)
    num_data = 16
    h1 = num_features * ratio[0]
    h2 = num_features * ratio[1]

    key = jax.random.PRNGKey(0)
    ks = jax.random.split(key, 12)

    node_feat = jax.random.normal(ks[0], (num_data, in_features), jnp.float32)
    params = {
        "w1": 0.2 * jax.random.normal(ks[1], (h1, in_features), jnp.float32),
        "g1": 1.0 + 0.1 * jax.random.normal(ks[2], (h1,), jnp.float32),
        "b1": 0.1 * jax.random.normal(ks[3], (h1,), jnp.float32),
        "m1": 0.1 * jax.random.normal(ks[4], (h1,), jnp.float32),
        "v1": 1.0 + 0.1 * jnp.abs(jax.random.normal(ks[5], (h1,), jnp.float32)),
        "w2": 0.2 * jax.random.normal(ks[6], (h2, h1), jnp.float32),
        "g2": 1.0 + 0.1 * jax.random.normal(ks[7], (h2,), jnp.float32),
        "b2": 0.1 * jax.random.normal(ks[8], (h2,), jnp.float32),
        "m2": 0.1 * jax.random.normal(ks[9], (h2,), jnp.float32),
        "v2": 1.0 + 0.1 * jnp.abs(jax.random.normal(ks[10], (h2,), jnp.float32)),
        "w3": 0.2 * jax.random.normal(ks[11], (h2,), jnp.float32),
        "b3": jnp.asarray(0.05, jnp.float32),
    }

    edge_feat, sim_val = edgenet_forward(node_feat, params)
    edge_feat = jax.block_until_ready(edge_feat)
    sim_val = jax.block_until_ready(sim_val)

    edge_ref, sim_ref = edgenet_reference(node_feat, params)

    assert edge_feat.shape == (1, num_data, num_data)
    assert sim_val.shape == (num_data, num_data)
    assert jnp.allclose(sim_val, sim_ref, atol=1e-4, rtol=1e-4), "sim_val mismatch"
    assert jnp.allclose(edge_feat, edge_ref, atol=1e-4, rtol=1e-4), "edge_feat mismatch"
    assert jnp.allclose(jnp.sum(edge_feat[0], axis=0),
                        jnp.ones((num_data,), jnp.float32), atol=1e-4)

    print("KERNEL_OK")
</pallas_src>

<mosaic_0001>
module attributes {stable_mosaic.version = 11 : i64} {
  func.func @_sim_mlp_kernel(%arg0: i32, %arg1: memref<8x32xf32, #tpu.memory_space<vmem>>, %arg2: memref<16x32xf32, #tpu.memory_space<vmem>>, %arg3: memref<32x32xf32, #tpu.memory_space<vmem>>, %arg4: memref<1x32xf32, #tpu.memory_space<vmem>>, %arg5: memref<1x32xf32, #tpu.memory_space<vmem>>, %arg6: memref<32x16xf32, #tpu.memory_space<vmem>>, %arg7: memref<1x16xf32, #tpu.memory_space<vmem>>, %arg8: memref<1x16xf32, #tpu.memory_space<vmem>>, %arg9: memref<16x1xf32, #tpu.memory_space<vmem>>, %arg10: memref<1x1xf32, #tpu.memory_space<vmem>>, %arg11: memref<128x1xf32, #tpu.memory_space<vmem>>) attributes {dimension_semantics = [#tpu.dimension_semantics<parallel>], iteration_bounds = array<i64: 2>, scalar_prefetch = 0 : i64, scratch_operands = 0 : i64, tpu.core_type = #tpu.core_type<tc>, window_params = [{transform_indices = @transform_0, window_bounds = array<i64: 8, 32>}, {pipeline_mode = #tpu.pipeline_mode<synchronous>, transform_indices = @transform_1, window_bounds = array<i64: 16, 32>}, {pipeline_mode = #tpu.pipeline_mode<synchronous>, transform_indices = @transform_2, window_bounds = array<i64: 32, 32>}, {pipeline_mode = #tpu.pipeline_mode<synchronous>, transform_indices = @transform_3, window_bounds = array<i64: 1, 32>}, {pipeline_mode = #tpu.pipeline_mode<synchronous>, transform_indices = @transform_4, window_bounds = array<i64: 1, 32>}, {pipeline_mode = #tpu.pipeline_mode<synchronous>, transform_indices = @transform_5, window_bounds = array<i64: 32, 16>}, {pipeline_mode = #tpu.pipeline_mode<synchronous>, transform_indices = @transform_6, window_bounds = array<i64: 1, 16>}, {pipeline_mode = #tpu.pipeline_mode<synchronous>, transform_indices = @transform_7, window_bounds = array<i64: 1, 16>}, {pipeline_mode = #tpu.pipeline_mode<synchronous>, transform_indices = @transform_8, window_bounds = array<i64: 16, 1>}, {pipeline_mode = #tpu.pipeline_mode<synchronous>, transform_indices = @transform_9, window_bounds = array<i64: 1, 1>}, {transform_indices = @transform_10, window_bounds = array<i64: 128, 1>}]} {
    %c0 = arith.constant 0 : index
    %c0_0 = arith.constant 0 : index
    %0 = vector.load %arg1[%c0, %c0_0] : memref<8x32xf32, #tpu.memory_space<vmem>>, vector<8x32xf32>
    %c0_1 = arith.constant 0 : index
    %c0_2 = arith.constant 0 : index
    %1 = vector.load %arg2[%c0_1, %c0_2] : memref<16x32xf32, #tpu.memory_space<vmem>>, vector<16x32xf32>
    %2 = vector.shape_cast %0 : vector<8x32xf32> to vector<8x1x32xf32>
    %3 = vector.shape_cast %1 : vector<16x32xf32> to vector<1x16x32xf32>
    %4 = vector.broadcast %2 : vector<8x1x32xf32> to vector<8x16x32xf32>
    %5 = vector.broadcast %3 : vector<1x16x32xf32> to vector<8x16x32xf32>
    %6 = arith.subf %4, %5 : vector<8x16x32xf32>
    %7 = math.absf %6 : vector<8x16x32xf32>
    %8 = vector.shape_cast %7 : vector<8x16x32xf32> to vector<128x32xf32>
    %c0_3 = arith.constant 0 : index
    %c0_4 = arith.constant 0 : index
    %9 = vector.load %arg3[%c0_3, %c0_4] : memref<32x32xf32, #tpu.memory_space<vmem>>, vector<32x32xf32>
    %cst = arith.constant dense<0.000000e+00> : vector<128x32xf32>
    %10 = tpu.matmul %8, %9, %cst {dimension_numbers = #tpu.dot_dimension_numbers<[1], [0], [0], [1], [0, 0, 1, 1], [], []>} : vector<128x32xf32>, vector<32x32xf32>, vector<128x32xf32> -> vector<128x32xf32>
    %c0_5 = arith.constant 0 : index
    %c0_6 = arith.constant 0 : index
    %11 = vector.load %arg4[%c0_5, %c0_6] : memref<1x32xf32, #tpu.memory_space<vmem>>, vector<1x32xf32>
    %12 = vector.broadcast %11 : vector<1x32xf32> to vector<128x32xf32>
    %13 = arith.mulf %10, %12 : vector<128x32xf32>
    %c0_7 = arith.constant 0 : index
    %c0_8 = arith.constant 0 : index
    %14 = vector.load %arg5[%c0_7, %c0_8] : memref<1x32xf32, #tpu.memory_space<vmem>>, vector<1x32xf32>
    %15 = vector.broadcast %14 : vector<1x32xf32> to vector<128x32xf32>
    %16 = arith.addf %13, %15 : vector<128x32xf32>
    %cst_9 = arith.constant 0.000000e+00 : f32
    %17 = vector.broadcast %cst_9 : f32 to vector<128x32xf32>
    %18 = arith.cmpf ogt, %16, %17 : vector<128x32xf32>
    %cst_10 = arith.constant 0.00999999977 : f32
    %19 = vector.broadcast %cst_10 : f32 to vector<128x32xf32>
    %20 = arith.mulf %19, %16 : vector<128x32xf32>
    %21 = arith.select %18, %16, %20 : vector<128x32xi1>, vector<128x32xf32>
    %c0_11 = arith.constant 0 : index
    %c0_12 = arith.constant 0 : index
    %22 = vector.load %arg6[%c0_11, %c0_12] : memref<32x16xf32, #tpu.memory_space<vmem>>, vector<32x16xf32>
    %cst_13 = arith.constant dense<0.000000e+00> : vector<128x16xf32>
    %23 = tpu.matmul %21, %22, %cst_13 {dimension_numbers = #tpu.dot_dimension_numbers<[1], [0], [0], [1], [0, 0, 1, 1], [], []>} : vector<128x32xf32>, vector<32x16xf32>, vector<128x16xf32> -> vector<128x16xf32>
    %c0_14 = arith.constant 0 : index
    %c0_15 = arith.constant 0 : index
    %24 = vector.load %arg7[%c0_14, %c0_15] : memref<1x16xf32, #tpu.memory_space<vmem>>, vector<1x16xf32>
    %25 = vector.broadcast %24 : vector<1x16xf32> to vector<128x16xf32>
    %26 = arith.mulf %23, %25 : vector<128x16xf32>
    %c0_16 = arith.constant 0 : index
    %c0_17 = arith.constant 0 : index
    %27 = vector.load %arg8[%c0_16, %c0_17] : memref<1x16xf32, #tpu.memory_space<vmem>>, vector<1x16xf32>
    %28 = vector.broadcast %27 : vector<1x16xf32> to vector<128x16xf32>
    %29 = arith.addf %26, %28 : vector<128x16xf32>
    %cst_18 = arith.constant 0.000000e+00 : f32
    %30 = vector.broadcast %cst_18 : f32 to vector<128x16xf32>
    %31 = arith.cmpf ogt, %29, %30 : vector<128x16xf32>
    %cst_19 = arith.constant 0.00999999977 : f32
    %32 = vector.broadcast %cst_19 : f32 to vector<128x16xf32>
    %33 = arith.mulf %32, %29 : vector<128x16xf32>
    %34 = arith.select %31, %29, %33 : vector<128x16xi1>, vector<128x16xf32>
    %c0_20 = arith.constant 0 : index
    %c0_21 = arith.constant 0 : index
    %35 = vector.load %arg9[%c0_20, %c0_21] : memref<16x1xf32, #tpu.memory_space<vmem>>, vector<16x1xf32>
    %cst_22 = arith.constant dense<0.000000e+00> : vector<128x1xf32>
    %36 = tpu.matmul %34, %35, %cst_22 {dimension_numbers = #tpu.dot_dimension_numbers<[1], [0], [0], [1], [0, 0, 1, 1], [], []>} : vector<128x16xf32>, vector<16x1xf32>, vector<128x1xf32> -> vector<128x1xf32>
    %c0_23 = arith.constant 0 : index
    %c0_24 = arith.constant 0 : index
    %37 = vector.load %arg10[%c0_23, %c0_24] : memref<1x1xf32, #tpu.memory_space<vmem>>, vector<1x1xf32>
    %38 = vector.broadcast %37 : vector<1x1xf32> to vector<128x1xf32>
    %39 = arith.addf %36, %38 : vector<128x1xf32>
    %40 = arith.negf %39 : vector<128x1xf32>
    %41 = math.exp %40 : vector<128x1xf32>
    %cst_25 = arith.constant 1.000000e+00 : f32
    %42 = vector.broadcast %cst_25 : f32 to vector<128x1xf32>
    %43 = arith.addf %42, %41 : vector<128x1xf32>
    %44 = arith.divf %42, %43 : vector<128x1xf32>
    %c0_26 = arith.constant 0 : index
    %c0_27 = arith.constant 0 : index
    %45 = vector.load %arg11[%c0_26, %c0_27] : memref<128x1xf32, #tpu.memory_space<vmem>>, vector<128x1xf32>
    tpu.vector_store %arg11[%c0_26, %c0_27], %44 {strides = array<i32>} : memref<128x1xf32, #tpu.memory_space<vmem>>, vector<128x1xf32>,
    return
  }
  func.func @transform_0(%arg0: i32) -> (i32, i32) {
    %c0_i32 = arith.constant 0 : i32
    %c0_i32_0 = arith.constant 0 : i32
    return %arg0, %c0_i32 : i32, i32
  }
  func.func @transform_1(%arg0: i32) -> (i32, i32) {
    %c0_i32 = arith.constant 0 : i32
    %c0_i32_0 = arith.constant 0 : i32
    %c0_i32_1 = arith.constant 0 : i32
    return %c0_i32, %c0_i32_0 : i32, i32
  }
  func.func @transform_2(%arg0: i32) -> (i32, i32) {
    %c0_i32 = arith.constant 0 : i32
    %c0_i32_0 = arith.constant 0 : i32
    %c0_i32_1 = arith.constant 0 : i32
    return %c0_i32, %c0_i32_0 : i32, i32
  }
  func.func @transform_3(%arg0: i32) -> (i32, i32) {
    %c0_i32 = arith.constant 0 : i32
    %c0_i32_0 = arith.constant 0 : i32
    %c0_i32_1 = arith.constant 0 : i32
    return %c0_i32, %c0_i32_0 : i32, i32
  }
  func.func @transform_4(%arg0: i32) -> (i32, i32) {
    %c0_i32 = arith.constant 0 : i32
    %c0_i32_0 = arith.constant 0 : i32
    %c0_i32_1 = arith.constant 0 : i32
    return %c0_i32, %c0_i32_0 : i32, i32
  }
  func.func @transform_5(%arg0: i32) -> (i32, i32) {
    %c0_i32 = arith.constant 0 : i32
    %c0_i32_0 = arith.constant 0 : i32
    %c0_i32_1 = arith.constant 0 : i32
    return %c0_i32, %c0_i32_0 : i32, i32
  }
  func.func @transform_6(%arg0: i32) -> (i32, i32) {
    %c0_i32 = arith.constant 0 : i32
    %c0_i32_0 = arith.constant 0 : i32
    %c0_i32_1 = arith.constant 0 : i32
    return %c0_i32, %c0_i32_0 : i32, i32
  }
  func.func @transform_7(%arg0: i32) -> (i32, i32) {
    %c0_i32 = arith.constant 0 : i32
    %c0_i32_0 = arith.constant 0 : i32
    %c0_i32_1 = arith.constant 0 : i32
    return %c0_i32, %c0_i32_0 : i32, i32
  }
  func.func @transform_8(%arg0: i32) -> (i32, i32) {
    %c0_i32 = arith.constant 0 : i32
    %c0_i32_0 = arith.constant 0 : i32
    %c0_i32_1 = arith.constant 0 : i32
    return %c0_i32, %c0_i32_0 : i32, i32
  }
  func.func @transform_9(%arg0: i32) -> (i32, i32) {
    %c0_i32 = arith.constant 0 : i32
    %c0_i32_0 = arith.constant 0 : i32
    %c0_i32_1 = arith.constant 0 : i32
    return %c0_i32, %c0_i32_0 : i32, i32
  }
  func.func @transform_10(%arg0: i32) -> (i32, i32) {
    %c0_i32 = arith.constant 0 : i32
    %c0_i32_0 = arith.constant 0 : i32
    return %arg0, %c0_i32 : i32, i32
  }
}

</mosaic_0001>

<bundles_post_ra>
// kernel: tpu_custom_call.1
= control target key start
LH: loop header
LB: loop body
LE: loop exit
PB: predicated region body
PF: predicated region fallthrough
CT: control target
= control target key end

     0   :  { %s2209_s0 = inlined_call_operand.vmem [shape: f32[16,32], index: 0, kind: input, shape index: {}]   ;;  %s2210_s1 = inlined_call_operand.vmem [shape: f32[16,32], index: 1, kind: input, shape index: {}]   ;;  %s2211_s2 = inlined_call_operand.vmem [shape: f32[32,32], index: 2, kind: input, shape index: {}]   ;;  %s2212_s3 = inlined_call_operand.hbm [shape: f32[1,32], index: 3, kind: input, shape index: {}]   ;;  %s2213_s4 = inlined_call_operand.vmem [shape: f32[1,32], index: 4, kind: input, shape index: {}]   ;;  %s2214_s5 = inlined_call_operand.vmem [shape: f32[32,16], index: 5, kind: input, shape index: {}]   ;;  %s2215_s6 = inlined_call_operand.vmem [shape: f32[1,16], index: 6, kind: input, shape index: {}]   ;;  %s2216_s7 = inlined_call_operand.vmem [shape: f32[1,16], index: 7, kind: input, shape index: {}]   ;;  %s2217_s8 = inlined_call_operand.vmem [shape: f32[16,1], index: 8, kind: input, shape index: {}]   ;;  %s2218_s9 = inlined_call_operand.<no memory space> [shape: f32[1,1], index: 9, kind: input, shape index: {}]   ;;  %s2219_s10 = inlined_call_operand.vmem [shape: f32[256,1], index: 10, kind: output, shape index: {}]  }
   0x1   :  { %v15_v0 = vstv %s2218_s9 }
   0x2   :  { %16 = vst [vmem:[#allocation2] sm:$0x1] %v15_v0 }
   0x3   :  { %17 = vsyncpa [#allocation4], 0  ;;  %s1905_s15 = smov 0  }
   0x4 LB: > { %s1911_s16 = sadd.s32 4294967295, %s1843_s15   ;;  %p1467_p0 = scmp.ge.s32.totalorder %s1843_s15, 1  ;;  %s1843_s15 = sphi %s1905_s15, %s23_s15  }
   0x5   : > { %p269_p1 = scmp.lt.s32.totalorder %s1843_s15, 3  ;;  %p2220_p3 = scmp.eq.s32.totalorder %s1911_s16, 0 }
   0x6   : > { %s1845_s17 = smov [#allocation3]   ;;  %s1805_s22 = scalar_lea.hbm %s2212_s3, 16 }
   0x7   : > { %p1915_p2 = pnand %p1467_p0, %p269_p1  ;;  %s288_s18 = sshll.u32 %s1845_s17, 4  ;;  %s289_s18 = int_to_ptr.vmem [resolvable:$true] %s288_s18 }
   0x8   : > { %p1806_p6 = scmp.ne.s32.totalorder %s2212_s3, %s1805_s22  ;;  %p1812_p10 = scmp.lt.u32.totalorder %s1805_s22, %s2212_s3 }
   0x9   : > { %s2222_s9 = scalar_select %p1915_p2, 1, 0 }
   0xa   : > { %p1724_p4 = pneg %p1915_p2 }
   0xc   : > { %p1924_p5 = pnand %p2220_p3, %p1724_p4 }
   0xe   : > { %p1807_p7 = pneg %p1924_p5 }
  0x10   : > { %p1808_p8 = pnand %p1807_p7, %p1806_p6 }
  0x12   : > { %p1809_p9 = pneg %p1808_p8 }
  0x14   : > { %p1814_p11 = pnand %p1812_p10, %p1809_p9 }
  0x16   : > { %1817 = shalt.err (!%p1814_p11)
}
  0x17   : > { %s1818_s27 = scalar_lea.vmem %s289_s18, 16  ;;  %s1825_s28 = scalar_lea.vmem %s289_s18, 32 }
  0x18   : > { %p1819_p12 = scmp.ne.s32.totalorder %s289_s18, %s1818_s27  ;;  %p1826_p1 = scmp.lt.s32.totalorder %s289_s18, %s289_s18 }
  0x19   : > { %p1827_p4 = scmp.lt.s32.totalorder %s1825_s28, %s1818_s27 }
  0x1a   : > { %p1821_p13 = pnand %p1819_p12, %p1807_p7 }
  0x1b   : > { %p1828_p3 = por %p1827_p4, %p1826_p1 }
  0x1c   : > { %p1822_p0 = pneg %p1821_p13 }
  0x1e   : > { %p1829_p2 = pnand %p1828_p3, %p1822_p0 }
  0x20   : > { %1832 = shalt.err (!%p1829_p2)
}
  0x21   : > { %1727 = dma.hbm_to_vmem [thread:$0]  (!%p1924_p5), %s2212_s3, 16, %s289_s18, [#allocation4]  }
  0x22   : > { %p2224_p6 = scmp.ne.s32.totalorder %s2222_s9, 0 }
  0x23   : > { %p2225_p8 = scmp.eq.s32.totalorder (!%p2224_p6), %s1911_s16, 0 }
  0x24   : > { %326 = sbr.rel (%p2224_p6) target bundleno = 776 (0x308), region = 60 }
  0x2b   : > { %1838 = dma.done.wait (%p2225_p8), [#allocation4], 16   ;;  %p2226_p7 = pmov %p2225_p8 }
  0x2c   : > { %p363_p9 = scmp.lt.s32.totalorder %s1911_s16, 1  ;;  %v381_v1 = vlaneseq  ;;  %v1846_v2 = vmov 1966171168   ;;  %v498_v7 = vld [vmem:[%s2211_s2] sm:$0xff]  ;;  %v499_v8 = vld [vmem:[%s2211_s2 + $0x8] sm:$0xff]  ;;  %v500_v9 = vld [vmem:[%s2211_s2 + $0x10] sm:$0xff] }
  0x2d   : > { %1840 = vsyncadd (%p2226_p7), [#allocation4], 4294967280  ;;  %v379_v3 = vunpack.c.l.s4 %v1846_v2  ;;  %v1696_v10 = vpack.c.bf16 %v499_v8, %v498_v7  ;;  %v501_v11 = vld [vmem:[%s2211_s2 + $0x18] sm:$0xff]  ;;  %v790_v17 = vld [vmem:[%s2214_s5] sm:$0xff]  ;;  %vm502_vm0 = vcmask 261120   ;;  %s1473_s28 = sshll.u32 %s1911_s16, 4 }
  0x2e   : > { %s364_s11 = scalar_select %p363_p9, %s1911_s16, 1  ;;  %v382_v4 = vshrl.u32 %v381_v1, 7  ;;  %v1700_v13 = vpack.c.bf16 %v501_v11, %v500_v9  ;;  %v791_v18 = vld [vmem:[%s2214_s5 + $0x8] sm:$0xff]  ;;  %v1978_v22 = vld [vmem:[%s2210_s1] sm:$0xff]  ;;  %v792_v9 = vld [vmem:[%s2214_s5 + $0x10] sm:$0xff] }
  0x2f   : > { %v380_v5 = vunpack.c.0.s8 %v379_v3  ;;  %1697 = vmatprep.subr.bf16.mxu0 %v1696_v10  ;;  %1716 = vmatprep.subr.bf16.mxu1 %v1696_v10  ;;  %v1983_v23 = vld [vmem:[%s2210_s1 + $0x8] sm:$0xff]  ;;  %v1704_v24 = vpack.c.bf16 %v791_v18, %v790_v17  ;;  %v2042_v17 = vld [vmem:[%s2213_s4] ss:$0 sm:$0xff]  ;;  %p368_p2 = scmp.lt.s32.totalorder %s1473_s28, 31 }
  0x30   : > { %s1472_s12 = sshll.u32 %s364_s11, 3  ;;  %v1967_v15 = vsub.s32 0, %v382_v4  ;;  %1699 = vmatpush3.bf16.msra.mxu0 %v1696_v10  ;;  %1718 = vmatpush3.bf16.msra.mxu1 %v1696_v10  ;;  %v793_v10 = vld [vmem:[%s2214_s5 + $0x18] sm:$0xff] }
  0x31   : > { %s366_s9 = scalar_lea.vmem %s2209_s0, %s1472_s12  ;;  %v383_v6 = vsub.s32 %v380_v5, %v382_v4  ;;  %1701 = vmatprep.subr.bf16.mxu0 %v1700_v13  ;;  %1717 = vmatprep.subr.bf16.mxu1 %v1700_v13  ;;  %v1708_v11 = vpack.c.bf16 %v793_v10, %v792_v9  ;;  %s2228_s28 = smov (!%p368_p2, %s1473_s28), 31 }
  0x32   : > { %v373_v12 = vld [vmem:[%s366_s9] sm:$0xff]  ;;  %s1474_s16 = sshll.u32 %s2228_s28, 3 }
  0x33   : > { %v384_v14 = vrot.slane %v373_v12, %v383_v6  ;;  %v377_v16 = vcombine.high %v373_v12, %v373_v12  ;;  %v1081_v12 = vld [vmem:[%s2217_s8] sm:$0xff]  ;;  %s2169_s11 = scalar_lea.vmem %s2219_s10, %s1474_s16 }
  0x34   : > { %1703 = vmatpush3.bf16.msra.mxu0 %v1700_v13  ;;  %1719 = vmatpush3.bf16.msra.mxu1 %v1700_v13  ;;  %v1082_v13 = vld [vmem:[%s2217_s8 + $0x8] sm:$0xff] }
  0x35   : > { %v392_v19 = vcombine.high %v384_v14, %v384_v14  ;;  %v400_v20 = vrot.slane %v384_v14, %v383_v6  ;;  %v391_v21 = vrot.slane %v377_v16, %v383_v6  ;;  %1705 = vmatprep.subr.bf16.mxu1 %v1704_v24  ;;  %v1712_v14 = vpack.c.bf16 %v1082_v13, %v1081_v12 }
  0x37   : > { %v422_v25 = vcombine.high %v400_v20, %v400_v20  ;;  %v429_v26 = vrot.slane %v400_v20, %v1967_v15  ;;  %v414_v27 = vrot.slane %v392_v19, %v383_v6  ;;  %v393_v28 = vcombine.high %v391_v21, %v391_v21  ;;  %1713 = vmatprep.subr.bf16.mxu0 %v1712_v14 }
  0x38   : > { %v407_v29 = vrot.slane %v391_v21, %v383_v6 }
  0x39   : > { %v466_v30 = vsub.f32 %v429_v26, %v1978_v22  ;;  %v467_v31 = vsub.f32 %v429_v26, %v1983_v23  ;;  %v433_v32 = vrot.slane %v414_v27, %v1967_v15  ;;  %v437_v33 = vrot.slane %v422_v25, %v1967_v15 }
  0x3a   : > { %v424_v34 = vcombine.high %v414_v27, %v414_v27  ;;  %v445_v35 = vrot.slane %v407_v29, %v1967_v15  ;;  %v421_v36 = vrot.slane %v393_v28, %v383_v6  ;;  %v423_v43 = vcombine.high %v407_v29, %v407_v29 }
  0x3b   : > { %v482_v37 = vand.u32 2147483647, %v466_v30  ;;  %v483_v38 = vand.u32 2147483647, %v467_v31  ;;  %v468_v39 = vsub.f32 %v433_v32, %v1978_v22  ;;  %v469_v40 = vsub.f32 %v433_v32, %v1983_v23 }
  0x3c   : > { %v470_v41 = vsub.f32 %v437_v33, %v1978_v22  ;;  %v441_v42 = vrot.slane %v424_v34, %v1967_v15  ;;  %v474_v44 = vsub.f32 %v445_v35, %v1978_v22  ;;  %v471_v46 = vsub.f32 %v437_v33, %v1983_v23 }
  0x3d   : > { %1612 = vmatprep.mubr.msk.f32.mxu0 %vm502_vm0, %v482_v37  ;;  %v484_v45 = vand.u32 2147483647, %v468_v39  ;;  %v475_v47 = vsub.f32 %v445_v35, %v1983_v23  ;;  %v449_v48 = vrot.slane %v421_v36, %v1967_v15  ;;  %v485_v49 = vand.u32 2147483647, %v469_v40 }
  0x3e   : > { %1613 = vmatmul.mubr.msk.f32.vlgmr.msra.gmra.mrb[0].mxu0 %vm502_vm0, %v483_v38  ;;  %v486_v50 = vand.u32 2147483647, %v470_v41  ;;  %v472_v51 = vsub.f32 %v441_v42, %v1978_v22  ;;  %v490_v52 = vand.u32 2147483647, %v474_v44  ;;  %v453_v56 = vrot.slane %v423_v43, %v1967_v15 }
  0x3f   : > { %1615 = vmatprep.mubr.msk.f32.mxu0 %vm502_vm0, %v484_v45  ;;  %v491_v53 = vand.u32 2147483647, %v475_v47  ;;  %v476_v54 = vsub.f32 %v449_v48, %v1978_v22  ;;  %v477_v55 = vsub.f32 %v449_v48, %v1983_v23  ;;  %v425_v57 = vcombine.high %v421_v36, %v421_v36  ;;  %1715 = vmatpush3.bf16.msra.mxu0 %v1712_v14 }
  0x40   : > { %v487_v58 = vand.u32 2147483647, %v471_v46  ;;  %v473_v59 = vsub.f32 %v441_v42, %v1983_v23  ;;  %1624 = vmatprep.mubr.msk.f32.mxu1 %vm502_vm0, %v490_v52  ;;  %v478_v62 = vsub.f32 %v453_v56, %v1978_v22  ;;  %v479_v63 = vsub.f32 %v453_v56, %v1983_v23 }
  0x41   : > { %v492_v60 = vand.u32 2147483647, %v476_v54  ;;  %1625 = vmatmul.mubr.msk.f32.vlgmr.msra.gmra.mrb[0].mxu1 %vm502_vm0, %v491_v53  ;;  %v493_v61 = vand.u32 2147483647, %v477_v55  ;;  %v457_v0 = vrot.slane %v425_v57, %v1967_v15  ;;  %v488_v1 = vand.u32 2147483647, %v472_v51 }
  0x42   : > { %1616 = vmatmul.mubr.msk.f32.gmra.mrb[2].mxu0 %vm502_vm0, %v485_v49  ;;  %v494_v2 = vand.u32 2147483647, %v478_v62  ;;  %1707 = vmatpush3.bf16.msra.mxu1 %v1704_v24  ;;  %v489_v4 = vand.u32 2147483647, %v473_v59  ;;  %v495_v5 = vand.u32 2147483647, %v479_v63 }
  0x43   : > { %1618 = vmatprep.mubr.msk.f32.mxu0 %vm502_vm0, %v486_v50  ;;  %1627 = vmatprep.mubr.msk.f32.mxu1 %vm502_vm0, %v492_v60  ;;  %v480_v3 = vsub.f32 %v457_v0, %v1978_v22  ;;  %v481_v6 = vsub.f32 %v457_v0, %v1983_v23  ;;  %v2037_v15 = vld [vmem:[#allocation3] ss:$0 sm:$0xff] }
  0x44   : > { %1709 = vmatprep.subr.bf16.mxu1 %v1708_v11 }
  0x45   : > { %1628 = vmatmul.mubr.msk.f32.gmra.mrb[2].mxu1 %vm502_vm0, %v493_v61  ;;  %v496_v7 = vand.u32 2147483647, %v480_v3  ;;  %v497_v8 = vand.u32 2147483647, %v481_v6 }
  0x46   : > { %1619 = vmatmul.mubr.msk.f32.gmra.mrb[4].mxu0 %vm502_vm0, %v487_v58  ;;  %1630 = vmatprep.mubr.msk.f32.mxu1 %vm502_vm0, %v494_v2 }
  0x47   : > { %1621 = vmatprep.mubr.msk.f32.mxu0 %vm502_vm0, %v488_v1  ;;  %1711 = vmatpush3.bf16.msra.mxu1 %v1708_v11 }
  0x49   : > { %1631 = vmatmul.mubr.msk.f32.gmra.mrb[4].mxu1 %vm502_vm0, %v495_v5 }
  0x4a   : > { %1622 = vmatmul.mubr.msk.f32.gmra.mrb[6].mxu0 %vm502_vm0, %v489_v4  ;;  %1633 = vmatprep.mubr.msk.f32.mxu1 %vm502_vm0, %v496_v7 }
  0x4d   : > { %1634 = vmatmul.mubr.msk.f32.gmra.mrb[6].mxu1 %vm502_vm0, %v497_v8 }
 0x111   : > { %v1614_v16 = vpop.f32.mrb[0].mxu0 }
 0x112   : > { %v704_v18 = vmul.f32 %v1614_v16, %v2037_v15  ;;  %v617_v19 = vpop.f32.mrb[1].mxu0 }
 0x113   : > { %v703_v20 = vmul.f32 %v2037_v15, %v617_v19 }
 0x114   : > { %v727_v21 = vadd.f32 %v2042_v17, %v704_v18  ;;  %v1626_v24 = vpop.f32.mrb[0].mxu1 }
 0x115   : > { %v726_v22 = vadd.f32 %v2042_v17, %v703_v20  ;;  %v1617_v23 = vpop.f32.mrb[2].mxu0  ;;  %v657_v28 = vpop.f32.mrb[1].mxu1  ;;  %v712_v54 = vmul.f32 %v1626_v24, %v2037_v15 }
 0x116   : > { %v759_v25 = vmul.f32 0.01, %v727_v21  ;;  %v706_v26 = vmul.f32 %v1617_v23, %v2037_v15  ;;  %v627_v27 = vpop.f32.mrb[3].mxu0  ;;  %vm743_vm1 = vcmp.gt.f32.partialorder %v727_v21, 0.0  ;;  %v711_v35 = vmul.f32 %v2037_v15, %v657_v28 }
 0x117   : > { %v758_v29 = vmul.f32 0.01, %v726_v22  ;;  %v705_v30 = vmul.f32 %v2037_v15, %v627_v27  ;;  %vm742_vm2 = vcmp.gt.f32.partialorder %v726_v22, 0.0  ;;  %v735_v4 = vadd.f32 %v2042_v17, %v712_v54 }
 0x118   : > { %v729_v31 = vadd.f32 %v2042_v17, %v706_v26  ;;  %v1629_v36 = vpop.f32.mrb[2].mxu1  ;;  %v775_v37 = vsel %vm743_vm1, %v727_v21, %v759_v25  ;;  %v734_v49 = vadd.f32 %v2042_v17, %v711_v35  ;;  %v2100_v35 = vld [vmem:[%s2216_s7] ss:$0 sm:$0xff] }
 0x119   : > { %v728_v32 = vadd.f32 %v2042_v17, %v705_v30  ;;  %v1620_v33 = vpop.f32.mrb[4].mxu0  ;;  %v774_v34 = vsel %vm742_vm2, %v726_v22, %v758_v29  ;;  %v667_v43 = vpop.f32.mrb[3].mxu1  ;;  %v714_v60 = vmul.f32 %v1629_v36, %v2037_v15  ;;  %v767_v14 = vmul.f32 0.01, %v735_v4 }
 0x11a   : > { %v761_v38 = vmul.f32 0.01, %v729_v31  ;;  %v708_v39 = vmul.f32 %v1620_v33, %v2037_v15  ;;  %v637_v40 = vpop.f32.mrb[5].mxu0  ;;  %1644 = vmatprep.mubr.msk.f32.mxu1 %vm502_vm0, %v774_v34  ;;  %vm745_vm4 = vcmp.gt.f32.partialorder %v729_v31, 0.0  ;;  %v713_v45 = vmul.f32 %v2037_v15, %v667_v43 }
 0x11b   : > { %v760_v41 = vmul.f32 0.01, %v728_v32  ;;  %v707_v42 = vmul.f32 %v2037_v15, %v637_v40  ;;  %1645 = vmatmul.mubr.msk.f32.vlgmr.msra.gmra.mrb[8].mxu1 %vm502_vm0, %v775_v37  ;;  %vm744_vm3 = vcmp.gt.f32.partialorder %v728_v32, 0.0  ;;  %v766_v63 = vmul.f32 0.01, %v734_v49 }
 0x11c   : > { %v731_v44 = vadd.f32 %v2042_v17, %v708_v39  ;;  %v1632_v50 = vpop.f32.mrb[4].mxu1  ;;  %v777_v55 = vsel %vm745_vm4, %v729_v31, %v761_v38  ;;  %v736_v61 = vadd.f32 %v2042_v17, %v713_v45  ;;  %vm750_vm7 = vcmp.gt.f32.partialorder %v734_v49, 0.0 }
 0x11d   : > { %v730_v46 = vadd.f32 %v2042_v17, %v707_v42  ;;  %v1623_v47 = vpop.f32.mrb[6].mxu0  ;;  %v776_v48 = vsel %vm744_vm3, %v728_v32, %v760_v41  ;;  %v677_v56 = vpop.f32.mrb[5].mxu1  ;;  %v737_v8 = vadd.f32 %v2042_v17, %v714_v60  ;;  %v782_v12 = vsel %vm750_vm7, %v734_v49, %v766_v63 }
 0x11e   : > { %v763_v51 = vmul.f32 0.01, %v731_v44  ;;  %v710_v52 = vmul.f32 %v1623_v47, %v2037_v15  ;;  %v647_v53 = vpop.f32.mrb[7].mxu0  ;;  %1647 = vmatprep.mubr.msk.f32.mxu1 %vm502_vm0, %v776_v48  ;;  %vm747_vm6 = vcmp.gt.f32.partialorder %v731_v44, 0.0  ;;  %v715_v1 = vmul.f32 %v2037_v15, %v677_v56 }
 0x11f   : > { %v762_v57 = vmul.f32 0.01, %v730_v46  ;;  %v709_v58 = vmul.f32 %v2037_v15, %v647_v53  ;;  %1648 = vmatmul.mubr.msk.f32.gmra.mrb[10].mxu1 %vm502_vm0, %v777_v55  ;;  %vm746_vm5 = vcmp.gt.f32.partialorder %v730_v46, 0.0  ;;  %v768_v9 = vmul.f32 0.01, %v736_v61 }
 0x120   : > { %v733_v59 = vadd.f32 %v2042_v17, %v710_v52  ;;  %v1635_v2 = vpop.f32.mrb[6].mxu1  ;;  %v779_v5 = vsel %vm747_vm6, %v731_v44, %v763_v51  ;;  %v738_v11 = vadd.f32 %v2042_v17, %v715_v1  ;;  %v716_v16 = vmul.f32 %v1632_v50, %v2037_v15 }
 0x121   : > { %v732_v62 = vadd.f32 %v2042_v17, %v709_v58  ;;  %v778_v0 = vsel %vm746_vm5, %v730_v46, %v762_v57  ;;  %v687_v6 = vpop.f32.mrb[7].mxu1  ;;  %vm752_vm10 = vcmp.gt.f32.partialorder %v736_v61, 0.0  ;;  %vm751_vm11 = vcmp.gt.f32.partialorder %v735_v4, 0.0 }
 0x122   : > { %v765_v3 = vmul.f32 0.01, %v733_v59  ;;  %1650 = vmatprep.mubr.msk.f32.mxu1 %vm502_vm0, %v778_v0  ;;  %vm749_vm9 = vcmp.gt.f32.partialorder %v733_v59, 0.0  ;;  %v717_v13 = vmul.f32 %v2037_v15, %v687_v6  ;;  %v769_v19 = vmul.f32 0.01, %v737_v8 }
 0x123   : > { %v764_v7 = vmul.f32 0.01, %v732_v62  ;;  %1651 = vmatmul.mubr.msk.f32.gmra.mrb[12].mxu1 %vm502_vm0, %v779_v5  ;;  %vm748_vm8 = vcmp.gt.f32.partialorder %v732_v62, 0.0  ;;  %v770_v20 = vmul.f32 0.01, %v738_v11  ;;  %v784_v22 = vsel %vm752_vm10, %v736_v61, %v768_v9 }
 0x124   : > { %v781_v18 = vsel %vm749_vm9, %v733_v59, %v765_v3  ;;  %v740_v21 = vadd.f32 %v2042_v17, %v717_v13  ;;  %v739_v23 = vadd.f32 %v2042_v17, %v716_v16  ;;  %v718_v24 = vmul.f32 %v1635_v2, %v2037_v15 }
 0x125   : > { %v780_v10 = vsel %vm748_vm8, %v732_v62, %v764_v7  ;;  %v783_v25 = vsel %vm751_vm11, %v735_v4, %v767_v14  ;;  %vm754_vm12 = vcmp.gt.f32.partialorder %v738_v11, 0.0  ;;  %vm753_vm13 = vcmp.gt.f32.partialorder %v737_v8, 0.0 }
 0x126   : > { %1653 = vmatprep.mubr.msk.f32.mxu1 %vm502_vm0, %v780_v10  ;;  %v772_v26 = vmul.f32 0.01, %v740_v21  ;;  %v786_v27 = vsel %vm754_vm12, %v738_v11, %v770_v20  ;;  %v771_v28 = vmul.f32 0.01, %v739_v23  ;;  %v741_v29 = vadd.f32 %v2042_v17, %v718_v24  ;;  %v2095_v17 = vld [vmem:[%s2215_s6] ss:$0 sm:$0xff] }
 0x127   : > { %1654 = vmatmul.mubr.msk.f32.gmra.mrb[14].mxu1 %vm502_vm0, %v781_v18  ;;  %v785_v30 = vsel %vm753_vm13, %v737_v8, %v769_v19  ;;  %vm756_vm14 = vcmp.gt.f32.partialorder %v740_v21, 0.0  ;;  %vm755_vm15 = vcmp.gt.f32.partialorder %v739_v23, 0.0 }
 0x128   : > { %1656 = vmatprep.mubr.msk.f32.mxu1 %vm502_vm0, %v782_v12  ;;  %v788_v15 = vsel %vm756_vm14, %v740_v21, %v772_v26  ;;  %v773_v31 = vmul.f32 0.01, %v741_v29  ;;  %v787_v32 = vsel %vm755_vm15, %v739_v23, %v771_v28  ;;  %vm757_vm1 = vcmp.gt.f32.partialorder %v741_v29, 0.0 }
 0x12a   : > { %v789_v33 = vsel %vm757_vm1, %v741_v29, %v773_v31 }
 0x12b   : > { %1657 = vmatmul.mubr.msk.f32.gmra.mrb[16].mxu1 %vm502_vm0, %v783_v25 }
 0x12c   : > { %1659 = vmatprep.mubr.msk.f32.mxu1 %vm502_vm0, %v784_v22 }
 0x12f   : > { %1660 = vmatmul.mubr.msk.f32.gmra.mrb[18].mxu1 %vm502_vm0, %v785_v30 }
 0x130   : > { %1662 = vmatprep.mubr.msk.f32.mxu1 %vm502_vm0, %v786_v27 }
 0x133   : > { %1663 = vmatmul.mubr.msk.f32.gmra.mrb[20].mxu1 %vm502_vm0, %v787_v32 }
 0x134   : > { %1665 = vmatprep.mubr.msk.f32.mxu1 %vm502_vm0, %v788_v15 }
 0x137   : > { %1666 = vmatmul.mubr.msk.f32.gmra.mrb[22].mxu1 %vm502_vm0, %v789_v33  ;;  %vm1090_vm0 = vcmask 130048  }
 0x1ee   : > { %v1646_v34 = vpop.f32.mrb[8].mxu1 }
 0x1ef   : > { %v995_v36 = vmul.f32 %v1646_v34, %v2095_v17  ;;  %v908_v37 = vpop.f32.mrb[9].mxu1 }
 0x1f0   : > { %v994_v38 = vmul.f32 %v2095_v17, %v908_v37 }
 0x1f1   : > { %v1018_v39 = vadd.f32 %v2100_v35, %v995_v36 }
 0x1f2   : > { %v1017_v40 = vadd.f32 %v2100_v35, %v994_v38  ;;  %v1649_v41 = vpop.f32.mrb[10].mxu1 }
 0x1f3   : > { %v1050_v42 = vmul.f32 0.01, %v1018_v39  ;;  %v997_v43 = vmul.f32 %v1649_v41, %v2095_v17  ;;  %v918_v44 = vpop.f32.mrb[11].mxu1  ;;  %vm1034_vm2 = vcmp.gt.f32.partialorder %v1018_v39, 0.0 }
 0x1f4   : > { %v1049_v45 = vmul.f32 0.01, %v1017_v40  ;;  %v996_v46 = vmul.f32 %v2095_v17, %v918_v44  ;;  %vm1033_vm3 = vcmp.gt.f32.partialorder %v1017_v40, 0.0 }
 0x1f5   : > { %v1020_v47 = vadd.f32 %v2100_v35, %v997_v43  ;;  %v1066_v51 = vsel %vm1034_vm2, %v1018_v39, %v1050_v42 }
 0x1f6   : > { %v1019_v48 = vadd.f32 %v2100_v35, %v996_v46  ;;  %v1652_v49 = vpop.f32.mrb[12].mxu1  ;;  %v1065_v50 = vsel %vm1033_vm3, %v1017_v40, %v1049_v45 }
 0x1f7   : > { %v1052_v52 = vmul.f32 0.01, %v1020_v47  ;;  %v999_v53 = vmul.f32 %v1652_v49, %v2095_v17  ;;  %v928_v54 = vpop.f32.mrb[13].mxu1  ;;  %1672 = vmatprep.mubr.msk.f32.mxu0 %vm1090_vm0, %v1065_v50  ;;  %vm1036_vm5 = vcmp.gt.f32.partialorder %v1020_v47, 0.0 }
 0x1f8   : > { %v1051_v55 = vmul.f32 0.01, %v1019_v48  ;;  %v998_v56 = vmul.f32 %v2095_v17, %v928_v54  ;;  %1673 = vmatmul.mubr.msk.f32.vlgmr.msra.gmra.mrb[8].mxu0 %vm1090_vm0, %v1066_v51  ;;  %vm1035_vm4 = vcmp.gt.f32.partialorder %v1019_v48, 0.0 }
 0x1f9   : > { %v1022_v57 = vadd.f32 %v2100_v35, %v999_v53  ;;  %v1068_v0 = vsel %vm1036_vm5, %v1020_v47, %v1052_v52  ;;  %v2150_v52 = vld [vmem:[#allocation2] ss:$0 sm:$0xff] }
 0x1fa   : > { %v1021_v58 = vadd.f32 %v2100_v35, %v998_v56  ;;  %v1655_v59 = vpop.f32.mrb[14].mxu1  ;;  %v1067_v60 = vsel %vm1035_vm4, %v1019_v48, %v1051_v55 }
 0x1fb   : > { %v1054_v61 = vmul.f32 0.01, %v1022_v57  ;;  %v1001_v62 = vmul.f32 %v1655_v59, %v2095_v17  ;;  %v938_v63 = vpop.f32.mrb[15].mxu1  ;;  %1675 = vmatprep.mubr.msk.f32.mxu0 %vm1090_vm0, %v1067_v60  ;;  %vm1038_vm7 = vcmp.gt.f32.partialorder %v1022_v57, 0.0 }
 0x1fc   : > { %v1053_v1 = vmul.f32 0.01, %v1021_v58  ;;  %v1000_v2 = vmul.f32 %v2095_v17, %v938_v63  ;;  %1676 = vmatmul.mubr.msk.f32.gmra.mrb[10].mxu0 %vm1090_vm0, %v1068_v0  ;;  %vm1037_vm6 = vcmp.gt.f32.partialorder %v1021_v58, 0.0 }
 0x1fd   : > { %v1024_v3 = vadd.f32 %v2100_v35, %v1001_v62  ;;  %v1070_v10 = vsel %vm1038_vm7, %v1022_v57, %v1054_v61 }
 0x1fe   : > { %v1023_v4 = vadd.f32 %v2100_v35, %v1000_v2  ;;  %v1658_v5 = vpop.f32.mrb[16].mxu1  ;;  %v1069_v6 = vsel %vm1037_vm6, %v1021_v58, %v1053_v1 }
 0x1ff   : > { %v1056_v7 = vmul.f32 0.01, %v1024_v3  ;;  %v1003_v8 = vmul.f32 %v1658_v5, %v2095_v17  ;;  %v948_v9 = vpop.f32.mrb[17].mxu1  ;;  %1678 = vmatprep.mubr.msk.f32.mxu0 %vm1090_vm0, %v1069_v6  ;;  %vm1040_vm9 = vcmp.gt.f32.partialorder %v1024_v3, 0.0 }
 0x200   : > { %v1055_v11 = vmul.f32 0.01, %v1023_v4  ;;  %v1002_v12 = vmul.f32 %v2095_v17, %v948_v9  ;;  %1679 = vmatmul.mubr.msk.f32.gmra.mrb[12].mxu0 %vm1090_vm0, %v1070_v10  ;;  %vm1039_vm8 = vcmp.gt.f32.partialorder %v1023_v4, 0.0 }
 0x201   : > { %v1026_v13 = vadd.f32 %v2100_v35, %v1003_v8  ;;  %v1072_v22 = vsel %vm1040_vm9, %v1024_v3, %v1056_v7 }
 0x202   : > { %v1025_v14 = vadd.f32 %v2100_v35, %v1002_v12  ;;  %v1661_v16 = vpop.f32.mrb[18].mxu1  ;;  %v1071_v18 = vsel %vm1039_vm8, %v1023_v4, %v1055_v11 }
 0x203   : > { %v1058_v19 = vmul.f32 0.01, %v1026_v13  ;;  %v1005_v20 = vmul.f32 %v1661_v16, %v2095_v17  ;;  %v958_v21 = vpop.f32.mrb[19].mxu1  ;;  %1681 = vmatprep.mubr.msk.f32.mxu0 %vm1090_vm0, %v1071_v18  ;;  %vm1042_vm11 = vcmp.gt.f32.partialorder %v1026_v13, 0.0 }
 0x204   : > { %v1057_v23 = vmul.f32 0.01, %v1025_v14  ;;  %v1004_v24 = vmul.f32 %v2095_v17, %v958_v21  ;;  %1682 = vmatmul.mubr.msk.f32.gmra.mrb[14].mxu0 %vm1090_vm0, %v1072_v22  ;;  %vm1041_vm10 = vcmp.gt.f32.partialorder %v1025_v14, 0.0 }
 0x205   : > { %v1028_v25 = vadd.f32 %v2100_v35, %v1005_v20  ;;  %v1074_v31 = vsel %vm1042_vm11, %v1026_v13, %v1058_v19 }
 0x206   : > { %v1027_v26 = vadd.f32 %v2100_v35, %v1004_v24  ;;  %v1664_v27 = vpop.f32.mrb[20].mxu1  ;;  %v1073_v28 = vsel %vm1041_vm10, %v1025_v14, %v1057_v23 }
 0x207   : > { %v1060_v29 = vmul.f32 0.01, %v1028_v25  ;;  %v1007_v30 = vmul.f32 %v1664_v27, %v2095_v17  ;;  %v968_v15 = vpop.f32.mrb[21].mxu1  ;;  %1684 = vmatprep.mubr.msk.f32.mxu0 %vm1090_vm0, %v1073_v28  ;;  %vm1044_vm13 = vcmp.gt.f32.partialorder %v1028_v25, 0.0 }
 0x208   : > { %v1059_v32 = vmul.f32 0.01, %v1027_v26  ;;  %v1006_v33 = vmul.f32 %v2095_v17, %v968_v15  ;;  %1685 = vmatmul.mubr.msk.f32.gmra.mrb[16].mxu0 %vm1090_vm0, %v1074_v31  ;;  %vm1043_vm12 = vcmp.gt.f32.partialorder %v1027_v26, 0.0 }
 0x209   : > { %v1030_v34 = vadd.f32 %v2100_v35, %v1007_v30  ;;  %v1076_v42 = vsel %vm1044_vm13, %v1028_v25, %v1060_v29 }
 0x20a   : > { %v1029_v36 = vadd.f32 %v2100_v35, %v1006_v33  ;;  %v1667_v37 = vpop.f32.mrb[22].mxu1  ;;  %v1075_v38 = vsel %vm1043_vm12, %v1027_v26, %v1059_v32 }
 0x20b   : > { %v1062_v39 = vmul.f32 0.01, %v1030_v34  ;;  %v1009_v40 = vmul.f32 %v1667_v37, %v2095_v17  ;;  %v978_v41 = vpop.f32.mrb[23].mxu1  ;;  %1687 = vmatprep.mubr.msk.f32.mxu0 %vm1090_vm0, %v1075_v38  ;;  %vm1046_vm15 = vcmp.gt.f32.partialorder %v1030_v34, 0.0 }
 0x20c   : > { %v1061_v43 = vmul.f32 0.01, %v1029_v36  ;;  %v1008_v44 = vmul.f32 %v2095_v17, %v978_v41  ;;  %1688 = vmatmul.mubr.msk.f32.gmra.mrb[18].mxu0 %vm1090_vm0, %v1076_v42  ;;  %vm1045_vm14 = vcmp.gt.f32.partialorder %v1029_v36, 0.0 }
 0x20d   : > { %v1032_v45 = vadd.f32 %v2100_v35, %v1009_v40  ;;  %v1078_v49 = vsel %vm1046_vm15, %v1030_v34, %v1062_v39 }
 0x20e   : > { %v1031_v46 = vadd.f32 %v2100_v35, %v1008_v44  ;;  %v1077_v47 = vsel %vm1045_vm14, %v1029_v36, %v1061_v43 }
 0x20f   : > { %v1064_v48 = vmul.f32 0.01, %v1032_v45  ;;  %1690 = vmatprep.mubr.msk.f32.mxu0 %vm1090_vm0, %v1077_v47  ;;  %vm1048_vm2 = vcmp.gt.f32.partialorder %v1032_v45, 0.0 }
 0x210   : > { %v1063_v50 = vmul.f32 0.01, %v1031_v46  ;;  %1691 = vmatmul.mubr.msk.f32.gmra.mrb[20].mxu0 %vm1090_vm0, %v1078_v49  ;;  %vm1047_vm1 = vcmp.gt.f32.partialorder %v1031_v46, 0.0 }
 0x211   : > { %v1080_v17 = vsel %vm1048_vm2, %v1032_v45, %v1064_v48 }
 0x212   : > { %v1079_v51 = vsel %vm1047_vm1, %v1031_v46, %v1063_v50 }
 0x213   : > { %1693 = vmatprep.mubr.msk.f32.mxu0 %vm1090_vm0, %v1079_v51 }
 0x214   : > { %1694 = vmatmul.mubr.msk.f32.gmra.mrb[22].mxu0 %vm1090_vm0, %v1080_v17  ;;  %vm1380_vm0 = vcmask 7168  }
 0x2cb   : > { %v1674_v53 = vpop.f32.mrb[8].mxu0 }
 0x2cc   : > { %v1211_v35 = vadd.f32 %v1674_v53, %v2150_v52  ;;  %v1205_v54 = vpop.f32.mrb[9].mxu0 }
 0x2cd   : > { %v1206_v55 = vadd.f32 %v2150_v52, %v1205_v54 }
 0x2ce   : > { %v1529_v56 = vmul.f32 -1.442695, %v1211_v35 }
 0x2cf   : > { %v1528_v57 = vmul.f32 -1.442695, %v1206_v55  ;;  %v1677_v58 = vpop.f32.mrb[10].mxu0 }
 0x2d0   : > { %1741 = vpow2.f32 %v1529_v56  ;;  %v1221_v59 = vadd.f32 %v1677_v58, %v2150_v52  ;;  %v1215_v60 = vpop.f32.mrb[11].mxu0 }
 0x2d1   : > { %1743 = vpow2.f32 %v1528_v57  ;;  %v1216_v61 = vadd.f32 %v2150_v52, %v1215_v60 }
 0x2d2   : > { %v1531_v62 = vmul.f32 -1.442695, %v1221_v59 }
 0x2d3   : > { %v1530_v63 = vmul.f32 -1.442695, %v1216_v61  ;;  %v1680_v0 = vpop.f32.mrb[12].mxu0 }
 0x2d4   : > { %1745 = vpow2.f32 %v1531_v62  ;;  %v1231_v1 = vadd.f32 %v1680_v0, %v2150_v52  ;;  %v1225_v2 = vpop.f32.mrb[13].mxu0 }
 0x2d5   : > { %1747 = vpow2.f32 %v1530_v63  ;;  %v1226_v3 = vadd.f32 %v2150_v52, %v1225_v2 }
 0x2d6   : > { %v1533_v4 = vmul.f32 -1.442695, %v1231_v1 }
 0x2d7   : > { %v1532_v5 = vmul.f32 -1.442695, %v1226_v3  ;;  %v1683_v6 = vpop.f32.mrb[14].mxu0 }
 0x2d8   : > { %1749 = vpow2.f32 %v1533_v4  ;;  %v1241_v7 = vadd.f32 %v1683_v6, %v2150_v52  ;;  %v1235_v8 = vpop.f32.mrb[15].mxu0 }
 0x2d9   : > { %1751 = vpow2.f32 %v1532_v5  ;;  %v1236_v9 = vadd.f32 %v2150_v52, %v1235_v8 }
 0x2da   : > { %v1742_v10 = vpop.eup %1741  ;;  %v1535_v11 = vmul.f32 -1.442695, %v1241_v7 }
 0x2db   : > { %v1744_v12 = vpop.eup %1743  ;;  %v1333_v13 = vadd.f32 1.0, %v1742_v10  ;;  %v1534_v14 = vmul.f32 -1.442695, %v1236_v9  ;;  %v1686_v16 = vpop.f32.mrb[16].mxu0 }
 0x2dc   : > { %v1332_v18 = vadd.f32 1.0, %v1744_v12  ;;  %1753 = vpow2.f32 %v1535_v11  ;;  %v1251_v19 = vadd.f32 %v1686_v16, %v2150_v52  ;;  %v1245_v20 = vpop.f32.mrb[17].mxu0 }
 0x2dd   : > { %1755 = vrcp.f32 %v1333_v13  ;;  %v1246_v21 = vadd.f32 %v2150_v52, %v1245_v20 }
 0x2de   : > { %v1746_v22 = vpop.eup %1745  ;;  %1757 = vrcp.f32 %v1332_v18  ;;  %v1537_v23 = vmul.f32 -1.442695, %v1251_v19 }
 0x2df   : > { %v1748_v24 = vpop.eup %1747  ;;  %v1335_v25 = vadd.f32 1.0, %v1746_v22  ;;  %1759 = vpow2.f32 %v1534_v14  ;;  %v1536_v26 = vmul.f32 -1.442695, %v1246_v21  ;;  %v1689_v27 = vpop.f32.mrb[18].mxu0 }
 0x2e0   : > { %v1334_v28 = vadd.f32 1.0, %v1748_v24  ;;  %1761 = vpow2.f32 %v1537_v23  ;;  %v1261_v29 = vadd.f32 %v1689_v27, %v2150_v52  ;;  %v1255_v30 = vpop.f32.mrb[19].mxu0 }
 0x2e1   : > { %1763 = vrcp.f32 %v1335_v25  ;;  %v1256_v15 = vadd.f32 %v2150_v52, %v1255_v30 }
 0x2e2   : > { %v1750_v31 = vpop.eup %1749  ;;  %1765 = vrcp.f32 %v1334_v28  ;;  %v1539_v32 = vmul.f32 -1.442695, %v1261_v29 }
 0x2e3   : > { %v1752_v33 = vpop.eup %1751  ;;  %v1337_v34 = vadd.f32 1.0, %v1750_v31  ;;  %1767 = vpow2.f32 %v1536_v26  ;;  %v1538_v36 = vmul.f32 -1.442695, %v1256_v15  ;;  %v1692_v37 = vpop.f32.mrb[20].mxu0 }
 0x2e4   : > { %v1336_v38 = vadd.f32 1.0, %v1752_v33  ;;  %1769 = vpow2.f32 %v1539_v32  ;;  %v1271_v39 = vadd.f32 %v1692_v37, %v2150_v52  ;;  %v1265_v40 = vpop.f32.mrb[21].mxu0 }
 0x2e5   : > { %1771 = vrcp.f32 %v1337_v34  ;;  %v1266_v41 = vadd.f32 %v2150_v52, %v1265_v40 }
 0x2e6   : > { %v1754_v42 = vpop.eup %1753  ;;  %1773 = vrcp.f32 %v1336_v38  ;;  %v1541_v43 = vmul.f32 -1.442695, %v1271_v39 }
 0x2e7   : > { %v1756_v44 = vpop.eup %1755  ;;  %v1339_v45 = vadd.f32 1.0, %v1754_v42  ;;  %1775 = vpow2.f32 %v1538_v36  ;;  %v1540_v46 = vmul.f32 -1.442695, %v1266_v41  ;;  %v1695_v47 = vpop.f32.mrb[22].mxu0 }
 0x2e8   : > { %v1758_v48 = vpop.eup %1757  ;;  %1382 = vst.msk [vmem:[%s2169_s11 + $0x8] sm:$0xff] %vm1380_vm0, %v1756_v44  ;;  %1777 = vpow2.f32 %v1541_v43  ;;  %v1281_v49 = vadd.f32 %v1695_v47, %v2150_v52  ;;  %v1275_v50 = vpop.f32.mrb[23].mxu0 }
 0x2e9   : > { %v1760_v51 = vpop.eup %1759  ;;  %1381 = vst.msk [vmem:[%s2169_s11] sm:$0xff] %vm1380_vm0, %v1758_v48  ;;  %1779 = vrcp.f32 %v1339_v45  ;;  %v1276_v17 = vadd.f32 %v2150_v52, %v1275_v50 }
 0x2ea   : > { %v1762_v53 = vpop.eup %1761  ;;  %v1338_v35 = vadd.f32 1.0, %v1760_v51  ;;  %1781 = vpow2.f32 %v1540_v46  ;;  %v1543_v54 = vmul.f32 -1.442695, %v1281_v49 }
 0x2eb   : > { %v1764_v55 = vpop.eup %1763  ;;  %v1341_v56 = vadd.f32 1.0, %v1762_v53  ;;  %v1542_v57 = vmul.f32 -1.442695, %v1276_v17 }
 0x2ec   : > { %v1766_v58 = vpop.eup %1765  ;;  %1384 = vst.msk [vmem:[%s2169_s11 + $0x18] sm:$0xff] %vm1380_vm0, %v1764_v55  ;;  %1783 = vrcp.f32 %v1338_v35 }
 0x2ed   : > { %v1768_v59 = vpop.eup %1767  ;;  %1383 = vst.msk [vmem:[%s2169_s11 + $0x10] sm:$0xff] %vm1380_vm0, %v1766_v58  ;;  %1785 = vrcp.f32 %v1341_v56 }
 0x2ee   : > { %v1770_v60 = vpop.eup %1769  ;;  %v1340_v61 = vadd.f32 1.0, %v1768_v59  ;;  %1787 = vpow2.f32 %v1543_v54 }
 0x2ef   : > { %v1772_v52 = vpop.eup %1771  ;;  %v1343_v62 = vadd.f32 1.0, %v1770_v60  ;;  %1789 = vpow2.f32 %v1542_v57 }
 0x2f0   : > { %v1774_v63 = vpop.eup %1773  ;;  %1386 = vst.msk [vmem:[%s2169_s11 + $0x28] sm:$0xff] %vm1380_vm0, %v1772_v52  ;;  %1791 = vrcp.f32 %v1340_v61 }
 0x2f1   : > { %v1776_v0 = vpop.eup %1775  ;;  %1385 = vst.msk [vmem:[%s2169_s11 + $0x20] sm:$0xff] %vm1380_vm0, %v1774_v63  ;;  %1793 = vrcp.f32 %v1343_v62 }
 0x2f2   : > { %v1778_v1 = vpop.eup %1777  ;;  %v1342_v2 = vadd.f32 1.0, %v1776_v0 }
 0x2f3   : > { %v1780_v3 = vpop.eup %1779  ;;  %v1345_v4 = vadd.f32 1.0, %v1778_v1 }
 0x2f4   : > { %v1782_v5 = vpop.eup %1781  ;;  %1388 = vst.msk [vmem:[%s2169_s11 + $0x38] sm:$0xff] %vm1380_vm0, %v1780_v3  ;;  %1795 = vrcp.f32 %v1342_v2 }
 0x2f5   : > { %1797 = vrcp.f32 %v1345_v4  ;;  %v1344_v6 = vadd.f32 1.0, %v1782_v5 }
 0x2f6   : > { %v1784_v7 = vpop.eup %1783 }
 0x2f7   : > { %v1786_v8 = vpop.eup %1785  ;;  %1387 = vst.msk [vmem:[%s2169_s11 + $0x30] sm:$0xff] %vm1380_vm0, %v1784_v7  ;;  %1799 = vrcp.f32 %v1344_v6 }
 0x2f8   : > { %v1788_v9 = vpop.eup %1787  ;;  %1390 = vst.msk [vmem:[%s2169_s11 + $0x48] sm:$0xff] %vm1380_vm0, %v1786_v8 }
 0x2f9   : > { %v1790_v10 = vpop.eup %1789  ;;  %v1347_v11 = vadd.f32 1.0, %v1788_v9 }
 0x2fa   : > { %v1792_v12 = vpop.eup %1791  ;;  %v1346_v13 = vadd.f32 1.0, %v1790_v10 }
 0x2fb   : > { %v1794_v14 = vpop.eup %1793  ;;  %1389 = vst.msk [vmem:[%s2169_s11 + $0x40] sm:$0xff] %vm1380_vm0, %v1792_v12  ;;  %1801 = vrcp.f32 %v1347_v11 }
 0x2fc   : > { %1392 = vst.msk [vmem:[%s2169_s11 + $0x58] sm:$0xff] %vm1380_vm0, %v1794_v14  ;;  %1803 = vrcp.f32 %v1346_v13 }
 0x2fe   : > { %v1796_v16 = vpop.eup %1795 }
 0x2ff   : > { %v1798_v18 = vpop.eup %1797  ;;  %1391 = vst.msk [vmem:[%s2169_s11 + $0x50] sm:$0xff] %vm1380_vm0, %v1796_v16 }
 0x300   : > { %1394 = vst.msk [vmem:[%s2169_s11 + $0x68] sm:$0xff] %vm1380_vm0, %v1798_v18 }
 0x301   : > { %v1800_v19 = vpop.eup %1799 }
 0x302   : > { %1393 = vst.msk [vmem:[%s2169_s11 + $0x60] sm:$0xff] %vm1380_vm0, %v1800_v19 }
 0x305   : > { %v1802_v20 = vpop.eup %1801 }
 0x306   : > { %v1804_v21 = vpop.eup %1803  ;;  %1396 = vst.msk [vmem:[%s2169_s11 + $0x78] sm:$0xff] %vm1380_vm0, %v1802_v20 }
 0x307   : > { %1395 = vst.msk [vmem:[%s2169_s11 + $0x70] sm:$0xff] %vm1380_vm0, %v1804_v21 }
 0x308 PF: > { %s23_s15 = sadd.s32 1, %s1843_s15  }
 0x309   : > { %p20_p3 = scmp.ge.s32.totalorder %s23_s15, 4  }
 0x30b   :  { %22 = sbr.rel (!%p20_p3) target bundleno = 4 (0x4), region = 95 }
 0x312   :  { %1419 = vsyncpa [#allocation4], 1 }
 0x313   :  { %1421 = vsyncpa [#allocation4 + $0x1], 1 }

</bundles_post_ra>
